<compile_context>
chip_gen: v7x
topology: tpu7x:2x2x1
jax: 0.10.0
libtpu: 0.0.40
codegen_flags: <defaults>
</compile_context>

<pallas_src>
import jax
import jax.numpy as jnp
from jax.experimental import pallas as pl
from jax.experimental.pallas import tpu as pltpu


def _normalize(x):
    # x: (TB, L, C, TR, 128) float32.  Normalize over L (axis=1), unbiased std.
    L = x.shape[1]
    mean = jnp.mean(x, axis=1, keepdims=True)            # (TB, 1, C, TR, 128)
    d = x - mean
    # torch.std default: unbiased (divide by L-1).  L == 1 -> NaN, as in torch.
    var = jnp.sum(d * d, axis=1, keepdims=True) * (jnp.float32(1.0) / jnp.float32(L - 1))
    std = jnp.sqrt(var)
    inv = pl.reciprocal(std + 1e-12, approx=False)        # hoisted out of the L broadcast
    return d * inv


def _lgn_affine_kernel(x_ref, g_ref, b_ref, o_ref):
    # x_ref/o_ref: (TB, L, C, TR, 128); g_ref/b_ref: (L, C)
    xn = _normalize(x_ref[...].astype(jnp.float32))
    g = g_ref[...].astype(jnp.float32)[None, :, :, None, None]
    b = b_ref[...].astype(jnp.float32)[None, :, :, None, None]
    o_ref[...] = (g * xn + b).astype(o_ref.dtype)


def _lgn_plain_kernel(x_ref, o_ref):
    o_ref[...] = _normalize(x_ref[...].astype(jnp.float32)).astype(o_ref.dtype)


def layer_gnorm_ms(x, gamma=None, beta=None, *, param=True,
                   tile_budget_bytes=4 * 1024 * 1024):
    """Pallas implementation of LayerGNormMS.forward.

    x     : (B, L, C, H, W)
    gamma : (1, L, dim, 1, 1) with dim in {1, C}   (only used if param=True)
    beta  : (1, L, dim, 1, 1) with dim in {1, C}
    """
    B, L, C, H, W = x.shape
    S = H * W
    itemsize = jnp.dtype(x.dtype).itemsize
    lanes = 128
    sub = 32 // itemsize                 # dense sublane pack: 8 f32 / 16 bf16 / 32 int8

    # ---- spatial tiling: dense (rows, 128) layout -----------------------------
    r_needed = pl.cdiv(S, lanes)                       # rows of 128 lanes
    bytes_per_row = L * C * lanes * itemsize
    target_rows = max(sub, (tile_budget_bytes // bytes_per_row) // sub * sub)

    if r_needed <= target_rows:
        tr = r_needed                                   # full-extent rows (exempt from 8-div rule)
        grid_s = 1
    else:
        tr = target_rows                                # multiple of `sub` -> dense sublanes
        grid_s = pl.cdiv(r_needed, tr)
    r_pad = grid_s * tr
    s_pad = r_pad * lanes

    # ---- batch folding so each grid step moves a useful amount of data --------
    per_step_bytes = L * C * tr * lanes * itemsize
    if grid_s == 1:
        tb = min(B, max(1, tile_budget_bytes // max(1, per_step_bytes)))
        if B >= 2:
            tb = max(1, min(tb, B // 2))                # keep >= 2 grid steps (v7x: 2 TCs)
        while B % tb:
            tb -= 1
    else:
        tb = 1
    grid_b = B // tb
    grid = (grid_b, grid_s)

    # ---- wrapper-side layout plumbing (free reshape/pad, sliced off at the end)
    x4 = x.reshape(B, L, C, S)
    if s_pad != S:
        x4 = jnp.pad(x4, ((0, 0), (0, 0), (0, 0), (0, s_pad - S)))
    x5 = x4.reshape(B, L, C, r_pad, lanes)

    tile_bytes = tb * L * C * tr * lanes * itemsize
    vmem_limit = int(min(48 * 1024 * 1024, max(16 * 1024 * 1024, 5 * tile_bytes)))
    cparams = pltpu.CompilerParams(
        dimension_semantics=("parallel", "parallel"),
        vmem_limit_bytes=vmem_limit,
    )

    x_spec = pl.BlockSpec((tb, L, C, tr, lanes), lambda b, s: (b, 0, 0, s, 0))
    out_spec = pl.BlockSpec((tb, L, C, tr, lanes), lambda b, s: (b, 0, 0, s, 0))
    out_shape = jax.ShapeDtypeStruct((B, L, C, r_pad, lanes), x.dtype)

    if param:
        g2 = jnp.broadcast_to(gamma.reshape(L, -1), (L, C)).astype(jnp.float32)
        b2 = jnp.broadcast_to(beta.reshape(L, -1), (L, C)).astype(jnp.float32)
        gb_spec = pl.BlockSpec((L, C), lambda b, s: (0, 0))
        out5 = pl.pallas_call(
            _lgn_affine_kernel,
            out_shape=out_shape,
            grid=grid,
            in_specs=[x_spec, gb_spec, gb_spec],
            out_specs=out_spec,
            compiler_params=cparams,
        )(x5, g2, b2)
    else:
        out5 = pl.pallas_call(
            _lgn_plain_kernel,
            out_shape=out_shape,
            grid=grid,
            in_specs=[x_spec],
            out_specs=out_spec,
            compiler_params=cparams,
        )(x5)

    out = out5.reshape(B, L, C, s_pad)
    if s_pad != S:
        out = out[..., :S]
    return out.reshape(B, L, C, H, W)


def _reference(x, gamma=None, beta=None, param=True):
    L = x.shape[1]
    mean = jnp.mean(x, axis=1, keepdims=True)
    var = jnp.sum((x - mean) ** 2, axis=1, keepdims=True) / (L - 1)   # unbiased
    std = jnp.sqrt(var)
    xn = (x - mean) / (std + 1e-12)
    if param:
        xn = gamma * xn + beta
    return xn


if __name__ == "__main__":
    key = jax.random.PRNGKey(0)
    kx, kg, kb, kx2 = jax.random.split(key, 4)

    # Small shapes consistent with the module: l=6 groups, dim=4 channels.
    B, L, C, H, W = 2, 6, 4, 8, 16
    x = jax.random.normal(kx, (B, L, C, H, W), dtype=jnp.float32)
    gamma = 1.0 + 0.1 * jax.random.normal(kg, (1, L, C, 1, 1), dtype=jnp.float32)
    beta = 0.1 * jax.random.normal(kb, (1, L, C, 1, 1), dtype=jnp.float32)

    # param=True branch
    y = jax.block_until_ready(layer_gnorm_ms(x, gamma, beta, param=True))
    ref = _reference(x, gamma, beta, param=True)
    assert y.shape == x.shape, y.shape
    assert jnp.allclose(y, ref, atol=1e-5, rtol=1e-5), "param=True mismatch"

    # param=False branch
    y2 = jax.block_until_ready(layer_gnorm_ms(x, param=False))
    ref2 = _reference(x, param=False)
    assert jnp.allclose(y2, ref2, atol=1e-5, rtol=1e-5), "param=False mismatch"

    # Unaligned spatial extent (exercises the lane-padding / slice path).
    Hu, Wu = 5, 7
    xu = jax.random.normal(kx2, (B, L, C, Hu, Wu), dtype=jnp.float32)
    yu = jax.block_until_ready(layer_gnorm_ms(xu, gamma, beta, param=True))
    refu = _reference(xu, gamma, beta, param=True)
    assert yu.shape == xu.shape, yu.shape
    assert jnp.allclose(yu, refu, atol=1e-5, rtol=1e-5), "unaligned mismatch"

    print("KERNEL_OK")
</pallas_src>

<mosaic_0001>
module attributes {stable_mosaic.version = 11 : i64} {
  func.func @_lgn_affine_kernel(%arg0: i32, %arg1: i32, %arg2: memref<1x6x4x1x128xf32, #tpu.memory_space<vmem>>, %arg3: memref<6x4xf32, #tpu.memory_space<vmem>>, %arg4: memref<6x4xf32, #tpu.memory_space<vmem>>, %arg5: memref<1x6x4x1x128xf32, #tpu.memory_space<vmem>>) attributes {dimension_semantics = [#tpu.dimension_semantics<parallel>, #tpu.dimension_semantics<parallel>], iteration_bounds = array<i64: 2, 1>, scalar_prefetch = 0 : i64, scratch_operands = 0 : i64, tpu.core_type = #tpu.core_type<tc>, window_params = [{transform_indices = @transform_0, window_bounds = array<i64: 1, 6, 4, 1, 128>}, {pipeline_mode = #tpu.pipeline_mode<synchronous>, transform_indices = @transform_1, window_bounds = array<i64: 6, 4>}, {pipeline_mode = #tpu.pipeline_mode<synchronous>, transform_indices = @transform_2, window_bounds = array<i64: 6, 4>}, {transform_indices = @transform_3, window_bounds = array<i64: 1, 6, 4, 1, 128>}]} {
    %c0 = arith.constant 0 : index
    %c0_0 = arith.constant 0 : index
    %c0_1 = arith.constant 0 : index
    %c0_2 = arith.constant 0 : index
    %c0_3 = arith.constant 0 : index
    %0 = vector.load %arg2[%c0, %c0_0, %c0_1, %c0_2, %c0_3] : memref<1x6x4x1x128xf32, #tpu.memory_space<vmem>>, vector<1x6x4x1x128xf32>
    %cst = arith.constant dense<0.000000e+00> : vector<1x4x1x128xf32>
    %1 = vector.multi_reduction <add>, %0, %cst [1] : vector<1x6x4x1x128xf32> to vector<1x4x1x128xf32>
    %2 = vector.shape_cast %1 : vector<1x4x1x128xf32> to vector<1x1x4x1x128xf32>
    %cst_4 = arith.constant 6.000000e+00 : f32
    %3 = vector.broadcast %cst_4 : f32 to vector<1x1x4x1x128xf32>
    %4 = arith.divf %2, %3 : vector<1x1x4x1x128xf32>
    %5 = vector.broadcast %4 : vector<1x1x4x1x128xf32> to vector<1x6x4x1x128xf32>
    %6 = arith.subf %0, %5 : vector<1x6x4x1x128xf32>
    %7 = arith.mulf %6, %6 : vector<1x6x4x1x128xf32>
    %cst_5 = arith.constant dense<0.000000e+00> : vector<1x4x1x128xf32>
    %8 = vector.multi_reduction <add>, %7, %cst_5 [1] : vector<1x6x4x1x128xf32> to vector<1x4x1x128xf32>
    %9 = vector.shape_cast %8 : vector<1x4x1x128xf32> to vector<1x1x4x1x128xf32>
    %cst_6 = arith.constant 1.000000e+00 : f32
    %cst_7 = arith.constant 5.000000e+00 : f32
    %10 = arith.divf %cst_6, %cst_7 : f32
    %11 = vector.broadcast %10 : f32 to vector<1x1x4x1x128xf32>
    %12 = arith.mulf %9, %11 : vector<1x1x4x1x128xf32>
    %13 = math.sqrt %12 : vector<1x1x4x1x128xf32>
    %cst_8 = arith.constant 9.99999996E-13 : f32
    %14 = vector.broadcast %cst_8 : f32 to vector<1x1x4x1x128xf32>
    %15 = arith.addf %13, %14 : vector<1x1x4x1x128xf32>
    %16 = tpu.reciprocal %15 : vector<1x1x4x1x128xf32> -> vector<1x1x4x1x128xf32>
    %17 = vector.broadcast %16 : vector<1x1x4x1x128xf32> to vector<1x6x4x1x128xf32>
    %18 = arith.mulf %6, %17 : vector<1x6x4x1x128xf32>
    %c0_9 = arith.constant 0 : index
    %c0_10 = arith.constant 0 : index
    %19 = vector.load %arg3[%c0_9, %c0_10] : memref<6x4xf32, #tpu.memory_space<vmem>>, vector<6x4xf32>
    %20 = vector.shape_cast %19 : vector<6x4xf32> to vector<1x6x4x1x1xf32>
    %c0_11 = arith.constant 0 : index
    %c0_12 = arith.constant 0 : index
    %21 = vector.load %arg4[%c0_11, %c0_12] : memref<6x4xf32, #tpu.memory_space<vmem>>, vector<6x4xf32>
    %22 = vector.shape_cast %21 : vector<6x4xf32> to vector<1x6x4x1x1xf32>
    %23 = vector.broadcast %20 : vector<1x6x4x1x1xf32> to vector<1x6x4x1x128xf32>
    %24 = arith.mulf %23, %18 : vector<1x6x4x1x128xf32>
    %25 = vector.broadcast %22 : vector<1x6x4x1x1xf32> to vector<1x6x4x1x128xf32>
    %26 = arith.addf %24, %25 : vector<1x6x4x1x128xf32>
    %c0_13 = arith.constant 0 : index
    %c0_14 = arith.constant 0 : index
    %c0_15 = arith.constant 0 : index
    %c0_16 = arith.constant 0 : index
    %c0_17 = arith.constant 0 : index
    %27 = vector.load %arg5[%c0_13, %c0_14, %c0_15, %c0_16, %c0_17] : memref<1x6x4x1x128xf32, #tpu.memory_space<vmem>>, vector<1x6x4x1x128xf32>
    tpu.vector_store %arg5[%c0_13, %c0_14, %c0_15, %c0_16, %c0_17], %26 {strides = array<i32>} : memref<1x6x4x1x128xf32, #tpu.memory_space<vmem>>, vector<1x6x4x1x128xf32>,
    return
  }
  func.func @transform_0(%arg0: i32, %arg1: i32) -> (i32, i32, i32, i32, i32) {
    %c0_i32 = arith.constant 0 : i32
    %c0_i32_0 = arith.constant 0 : i32
    %c0_i32_1 = arith.constant 0 : i32
    %c0_i32_2 = arith.constant 0 : i32
    return %arg0, %c0_i32, %c0_i32_0, %arg1, %c0_i32_1 : i32, i32, i32, i32, i32
  }
  func.func @transform_1(%arg0: i32, %arg1: i32) -> (i32, i32) {
    %c0_i32 = arith.constant 0 : i32
    %c0_i32_0 = arith.constant 0 : i32
    %c0_i32_1 = arith.constant 0 : i32
    return %c0_i32, %c0_i32_0 : i32, i32
  }
  func.func @transform_2(%arg0: i32, %arg1: i32) -> (i32, i32) {
    %c0_i32 = arith.constant 0 : i32
    %c0_i32_0 = arith.constant 0 : i32
    %c0_i32_1 = arith.constant 0 : i32
    return %c0_i32, %c0_i32_0 : i32, i32
  }
  func.func @transform_3(%arg0: i32, %arg1: i32) -> (i32, i32, i32, i32, i32) {
    %c0_i32 = arith.constant 0 : i32
    %c0_i32_0 = arith.constant 0 : i32
    %c0_i32_1 = arith.constant 0 : i32
    %c0_i32_2 = arith.constant 0 : i32
    return %arg0, %c0_i32, %c0_i32_0, %arg1, %c0_i32_1 : i32, i32, i32, i32, i32
  }
}

</mosaic_0001>

<bundles_post_ra>
// kernel: tpu_custom_call.1
= control target key start
LH: loop header
LB: loop body
LE: loop exit
PB: predicated region body
PF: predicated region fallthrough
CT: control target
= control target key end

     0   :  { %8 = vsyncpa [#allocation3], 0  ;;  %s1749_s0 = inlined_call_operand.hbm [shape: f32[2,6,4,1,128], index: 0, kind: input, shape index: {}]   ;;  %s1750_s1 = inlined_call_operand.vmem [shape: f32[6,4], index: 1, kind: input, shape index: {}]   ;;  %s1751_s2 = inlined_call_operand.vmem [shape: f32[6,4], index: 2, kind: input, shape index: {}]   ;;  %s1752_s3 = inlined_call_operand.hbm [shape: f32[2,6,4,1,128], index: 3, kind: output, shape index: {}]  }
   0x1   :  { %10 = vsyncpa [#allocation3 + $0x1], 0 }
   0x2   :  { %11 = vsyncpa [#allocation4], 0 }
   0x3   :  { %13 = vsyncpa [#allocation4 + $0x1], 0  ;;  %s1121_s12 = smov 0   ;;  %s1123_s13 = smov 0  }
   0x4   :  { %s1125_s14 = smov 0   ;;  %s1127_s15 = smov 0  }
   0x5   :  { %s1129_s16 = smov 0   ;;  %s1131_s17 = smov 0  }
   0x6 LB: > { %s886_s18 = sadd.s32 4294967295, %s1093_s17   ;;  %s887_s19 = sadd.s32 4294967294, %s1093_s17   ;;  %s1093_s17 = sphi %s1131_s17, %s19_s17   ;;  %s1089_s16 = sphi %s1129_s16, %s1767_s16   ;;  %s1085_s15 = sphi %s1127_s15, %s1766_s15   ;;  %s1081_s14 = sphi %s1125_s14, %s1765_s14   ;;  %s1077_s13 = sphi %s1123_s13, %s1764_s13   ;;  %s1073_s12 = sphi %s1121_s12, %s1763_s12  }
   0x7   : > { %s31_s20 = sadd.s32 1, %s1089_s16  ;;  %s40_s21 = sadd.s32 1, %s1081_s14 }
   0x8   : > { %p33_p0 = scmp.ge.s32.totalorder %s31_s20, 2  ;;  %p47_p1 = scmp.ne.s32.totalorder %s1081_s14, %s1077_s13 }
   0x9   : > { %p48_p2 = scmp.eq.s32.totalorder %s1093_s17, 0  ;;  %p53_p3 = scmp.ne.s32.totalorder %s1077_s13, %s1073_s12 }
   0xa   : > { %s1769_s20 = smov (%p33_p0, %s31_s20), 0  ;;  %p54_p5 = scmp.eq.s32.totalorder %s886_s18, 0 }
   0xb   : > { %p1162_p4 = por %p48_p2, %p47_p1  ;;  %s35_s23 = ssub.s32 %s1089_s16, %s1769_s20 }
   0xc   : > { %p121_p6 = scmp.eq.s32.totalorder %s886_s18, 1  ;;  %p38_p7 = scmp.eq.s32.totalorder %s35_s23, 0 }
   0xd   : > { %p1168_p8 = por %p54_p5, %p53_p3  ;;  %p127_p10 = scmp.eq.s32.totalorder %s887_s19, 1 }
   0xe   : > { %p1172_p9 = por %p121_p6, %p47_p1  ;;  %p911_p13 = scmp.lt.s32.totalorder %s1093_s17, 2 }
   0xf   : > { %s1177_s26 = scalar_select %p38_p7, %s1081_s14, %s40_s21  }
  0x10   : > { %s1756_s25 = scalar_select %p1172_p9, 1, 0 }
  0x11   : > { %p1179_p11 = por %p127_p10, %p53_p3  ;;  %s153_s28 = sand.u32 1, %s1081_s14  }
  0x12   : > { %s895_s29 = smul.u32 24, %s153_s28  ;;  %p1189_p0 = pnand %p911_p13, %p1162_p4 }
  0x13   : > { %s1757_s27 = scalar_select %p1179_p11, 1, 0 }
  0x14   : > { %s896_s30 = smul.u32 384, %s1089_s16  ;;  %s157_s8 = scalar_lea.vmem [#allocation2], %s895_s29 }
  0x15   : > { %s165_s9 = sshll.u32 %s157_s8, 4  ;;  %s1201_s10 = scalar_lea.sflag [#allocation3], %s153_s28  ;;  %s1198_s9 = int_to_ptr.vmem [resolvable:$true] %s165_s9 }
  0x16   : > { %s1196_s7 = scalar_lea.hbm %s1749_s0, %s896_s30  ;;  %p983_p3 = pneg %p1189_p0 }
  0x17   : > { %s981_s11 = scalar_lea.hbm %s1196_s7, 384  ;;  %s986_s21 = scalar_lea.hbm %s1749_s0, 768 }
  0x18   : > { %p982_p2 = scmp.ne.s32.totalorder %s1196_s7, %s981_s11  ;;  %p987_p6 = scmp.lt.u32.totalorder %s1196_s7, %s1749_s0 }
  0x19   : > { %p988_p7 = scmp.lt.u32.totalorder %s986_s21, %s981_s11  ;;  %p990_p13 = scmp.lt.u32.totalorder %s981_s11, %s1196_s7 }
  0x1a   : > { %p984_p4 = pnand %p983_p3, %p982_p2 }
  0x1b   : > { %p989_p10 = por %p988_p7, %p987_p6 }
  0x1c   : > { %p985_p5 = pneg %p984_p4 }
  0x1d   : > { %p991_p12 = por %p990_p13, %p989_p10 }
  0x1f   : > { %p992_p1 = pnand %p991_p12, %p985_p5 }
  0x21   : > { %995 = shalt.err (!%p992_p1)
}
  0x22   : > { %s996_s28 = scalar_lea.vmem %s1198_s9, 384  ;;  %s1095_s29 = smov [#allocation2]  }
  0x23   : > { %p997_p2 = scmp.ne.s32.totalorder %s1198_s9, %s996_s28  ;;  %s1001_s30 = sshll.u32 %s1095_s29, 4  ;;  %s1002_s30 = int_to_ptr.vmem [resolvable:$false] %s1001_s30 }
  0x24   : > { %s1003_s5 = scalar_lea.vmem %s1002_s30, 768  ;;  %p1004_p9 = scmp.lt.s32.totalorder %s1198_s9, %s1002_s30 }
  0x25   : > { %p999_p4 = pnand %p997_p2, %p983_p3  ;;  %p1005_p6 = scmp.lt.s32.totalorder %s1003_s5, %s996_s28 }
  0x27   : > { %p1000_p11 = pneg %p999_p4  ;;  %p1006_p7 = por %p1005_p6, %p1004_p9 }
  0x29   : > { %p1007_p10 = pnand %p1006_p7, %p1000_p11 }
  0x2b   : > { %1010 = shalt.err (!%p1007_p10)
}
  0x2c   : > { %s1096_s6 = smov 16   ;;  %s1097_s8 = smov 1  }
  0x2d   : > { %906 = dma.hbm_to_vmem [thread:$0]  (!%p1189_p0), %s1196_s7, 384, %s1198_s9, %s1201_s10, %s1096_s6, %s1096_s6, %s1097_s8  }
  0x2e   : > { %p173_p12 = scmp.lt.s32.totalorder %s1093_s17, 3  ;;  %p1759_p1 = scmp.ge.s32.totalorder %s1093_s17, 1 }
  0x30   : > { %p174_p3 = pnand %p1759_p1, %p173_p12 }
  0x31   : > { %s1233_s11 = sand.u32 (!%p174_p3), 1, %s1077_s13  }
  0x32   : > { %177 = sbr.rel (%p174_p3) target bundleno = 225 (0xe1), region = 32  ;;  %s180_s19 = scalar_lea.sflag (!%p174_p3), [#allocation3], %s1233_s11 }
  0x33   : > { %s897_s18 = smul.u32 (!%p174_p3), 24, %s1233_s11 }
  0x35   : > { %s1239_s21 = scalar_lea.vmem (!%p174_p3), [#allocation2], %s897_s18 }
  0x39   : > { %1064 = dma.done.wait (%p1168_p8), %s180_s19, 384  }
  0x3a   : > { %1066 = vsyncadd (%p1168_p8), %s180_s19, 4294966912  ;;  %v437_v0 = vlaneseq  ;;  %v436_v6 = vld [vmem:[%s1750_s1] sm:$0x3f]  ;;  %vm230_vm0 = vcmask 1040384   ;;  %v1287_v21 = vld [vmem:[%s1239_s21 + $0x6] sm:$0x1] }
  0x3b   : > { %v1269_v15 = vld [vmem:[%s1239_s21] sm:$0x1]  ;;  %v1272_v16 = vld [vmem:[%s1239_s21 + $0x4] sm:$0x1]  ;;  %v1278_v18 = vld [vmem:[%s1239_s21 + $0x1] sm:$0x1] }
  0x3c   : > { %v1245_v1 = vshrl.u32 %v437_v0, 7  ;;  %v575_v17 = vld [vmem:[%s1751_s2] sm:$0x3f]  ;;  %v231_v22 = vsel %vm230_vm0, %v1269_v15, 0.0  ;;  %v232_v23 = vsel %vm230_vm0, %v1272_v16, 0.0  ;;  %v242_v27 = vsel %vm230_vm0, %v1278_v18, 0.0 }
  0x3d   : > { %v1281_v19 = vld [vmem:[%s1239_s21 + $0x5] sm:$0x1]  ;;  %v1284_v20 = vld [vmem:[%s1239_s21 + $0x2] sm:$0x1]  ;;  %v1296_v26 = vld [vmem:[%s1239_s21 + $0x8] sm:$0x1]  ;;  %v233_v33 = vadd.f32 %v232_v23, %v231_v22 }
  0x3e   : > { %v1248_v2 = vsub.s32 2, %v1245_v1  ;;  %v1251_v3 = vsub.s32 0, %v1245_v1  ;;  %v1254_v4 = vsub.s32 3, %v1245_v1  ;;  %v1257_v5 = vsub.s32 1, %v1245_v1  ;;  %v1303_v29 = vld [vmem:[%s1239_s21 + $0x3] sm:$0x1] }
  0x3f   : > { %v474_v11 = vsub.s32 5, %v1245_v1  ;;  %v467_v12 = vsub.s32 4, %v1245_v1  ;;  %v243_v28 = vsel %vm230_vm0, %v1281_v19, 0.0  ;;  %v1306_v30 = vld [vmem:[%s1239_s21 + $0x7] sm:$0x1]  ;;  %v253_v34 = vsel %vm230_vm0, %v1284_v20, 0.0 }
  0x40   : > { %v454_v7 = vrot.slane %v436_v6, %v1248_v2  ;;  %v440_v8 = vrot.slane %v436_v6, %v1251_v3  ;;  %v461_v9 = vrot.slane %v436_v6, %v1254_v4  ;;  %v447_v10 = vrot.slane %v436_v6, %v1257_v5  ;;  %v1309_v31 = vld [vmem:[%s1239_s21 + $0x9] sm:$0x1]  ;;  %v1312_v32 = vld [vmem:[%s1239_s21 + $0xa] sm:$0x1]  ;;  %v1320_v37 = vld [vmem:[%s1239_s21 + $0xb] sm:$0x1] }
  0x41   : > { %v475_v13 = vrot.slane %v436_v6, %v474_v11  ;;  %v468_v14 = vrot.slane %v436_v6, %v467_v12  ;;  %v586_v24 = vrot.slane %v575_v17, %v1257_v5  ;;  %v579_v25 = vrot.slane %v575_v17, %v1251_v3  ;;  %v1323_v38 = vld [vmem:[%s1239_s21 + $0xc] sm:$0x1]  ;;  %v1335_v45 = vld [vmem:[%s1239_s21 + $0xd] sm:$0x1]  ;;  %v1342_v51 = vld [vmem:[%s1239_s21 + $0xe] sm:$0x1] }
  0x42   : > { %456 = vbcast.lane.b32.xlu1 %v454_v7, 256  ;;  %442 = vbcast.lane.b32.xlu0 %v440_v8, 256  ;;  %v254_v35 = vsel %vm230_vm0, %v1287_v21, 0.0  ;;  %v600_v36 = vrot.slane %v575_v17, %v1254_v4  ;;  %v234_v39 = vsel %vm230_vm0, %v1296_v26, 0.0  ;;  %v244_v40 = vadd.f32 %v243_v28, %v242_v27  ;;  %v1345_v52 = vld [vmem:[%s1239_s21 + $0xf] sm:$0x1] }
  0x43   : > { %v593_v41 = vrot.slane %v575_v17, %v1248_v2  ;;  %v245_v42 = vsel %vm230_vm0, %v1309_v31, 0.0  ;;  %v264_v43 = vsel %vm230_vm0, %v1303_v29, 0.0  ;;  %v265_v44 = vsel %vm230_vm0, %v1306_v30, 0.0  ;;  %v1350_v57 = vld [vmem:[%s1239_s21 + $0x10] sm:$0x1]  ;;  %s1635_s10 = scalar_lea.vmem [#allocation5], %s897_s18 }
  0x44   : > { %v255_v46 = vadd.f32 %v254_v35, %v253_v34  ;;  %v266_v47 = vadd.f32 %v265_v44, %v264_v43  ;;  %v235_v48 = vadd.f32 %v234_v39, %v233_v33  ;;  %v256_v49 = vsel %vm230_vm0, %v1312_v32, 0.0  ;;  %v1355_v59 = vld [vmem:[%s1239_s21 + $0x11] sm:$0x1]  ;;  %v1362_v1 = vld [vmem:[%s1239_s21 + $0x12] sm:$0x1]  ;;  %s898_s22 = smul.u32 384, %s1085_s15 }
  0x45   : > { %v267_v50 = vsel %vm230_vm0, %v1320_v37, 0.0  ;;  %v236_v53 = vsel %vm230_vm0, %v1323_v38, 0.0  ;;  %v246_v54 = vadd.f32 %v245_v42, %v244_v40  ;;  %v614_v55 = vrot.slane %v575_v17, %v474_v11  ;;  %v1365_v6 = vld [vmem:[%s1239_s21 + $0x13] sm:$0x1]  ;;  %v1375_v11 = vld [vmem:[%s1239_s21 + $0x15] sm:$0x1] }
  0x46   : > { %463 = vbcast.lane.b32.xlu1 %v461_v9, 256  ;;  %449 = vbcast.lane.b32.xlu0 %v447_v10, 256  ;;  %v607_v56 = vrot.slane %v575_v17, %v467_v12  ;;  %v247_v58 = vsel %vm230_vm0, %v1335_v45, 0.0  ;;  %v257_v60 = vadd.f32 %v256_v49, %v255_v46  ;;  %v268_v61 = vadd.f32 %v267_v50, %v266_v47  ;;  %v1370_v9 = vld [vmem:[%s1239_s21 + $0x14] sm:$0x1]  ;;  %s801_s15 = sshll.u32 %s1635_s10, 4  ;;  %s1682_s29 = scalar_lea.hbm %s1752_s3, %s898_s22  ;;  %s1688_s15 = int_to_ptr.vmem [resolvable:$true] %s801_s15 }
  0x47   : > { %v237_v62 = vadd.f32 %v236_v53, %v235_v48  ;;  %v258_v63 = vsel %vm230_vm0, %v1342_v51, 0.0  ;;  %v269_v0 = vsel %vm230_vm0, %v1345_v52, 0.0  ;;  %v238_v7 = vsel %vm230_vm0, %v1350_v57, 0.0  ;;  %v1382_v23 = vld [vmem:[%s1239_s21 + $0x16] sm:$0x1]  ;;  %s787_s30 = scalar_lea.sflag [#allocation4], %s1233_s11 }
  0x48   : > { %v248_v8 = vadd.f32 %v247_v58, %v246_v54  ;;  %v249_v10 = vsel %vm230_vm0, %v1355_v59, 0.0  ;;  %v259_v12 = vadd.f32 %v258_v63, %v257_v60  ;;  %v260_v17 = vsel %vm230_vm0, %v1362_v1, 0.0  ;;  %s1011_s5 = scalar_lea.vmem %s1688_s15, 384  ;;  %p1760_p9 = scmp.ne.s32.totalorder %s1756_s25, 0 }
  0x49   : > { %v271_v22 = vsel %vm230_vm0, %v1365_v6, 0.0  ;;  %v251_v28 = vsel %vm230_vm0, %v1375_v11, 0.0  ;;  %p1012_p8 = scmp.ne.s32.totalorder %s1688_s15, %s1011_s5  ;;  %s1098_s6 = smov [#allocation5]  }
  0x4a   : > { %477 = vbcast.lane.b32.xlu1 %v475_v13, 256  ;;  %470 = vbcast.lane.b32.xlu0 %v468_v14, 256  ;;  %v270_v13 = vadd.f32 %v269_v0, %v268_v61  ;;  %v239_v14 = vadd.f32 %v238_v7, %v237_v62  ;;  %v250_v27 = vadd.f32 %v249_v10, %v248_v8  ;;  %s1015_s8 = sshll.u32 %s1098_s6, 4  ;;  %s1016_s8 = int_to_ptr.vmem [resolvable:$false] %s1015_s8 }
  0x4b   : > { %v261_v33 = vadd.f32 %v260_v17, %v259_v12  ;;  %p1013_p11 = pnand %p1012_p8, %p1760_p9  ;;  %s1017_s18 = scalar_lea.vmem %s1016_s8, 768 }
  0x4c   : > { %v272_v34 = vadd.f32 %v271_v22, %v270_v13  ;;  %v252_v40 = vadd.f32 %v251_v28, %v250_v27  ;;  %p1018_p5 = scmp.lt.s32.totalorder %s1688_s15, %s1016_s8  ;;  %p1019_p13 = scmp.lt.s32.totalorder %s1017_s18, %s1011_s5 }
  0x4d   : > { %p1014_p0 = pneg %p1013_p11 }
  0x4e   : > { %588 = vbcast.lane.b32.xlu1 %v586_v24, 256  ;;  %581 = vbcast.lane.b32.xlu0 %v579_v25, 256  ;;  %v1385_v24 = vld [vmem:[%s1239_s21 + $0x17] sm:$0x1]  ;;  %v240_v25 = vsel %vm230_vm0, %v1370_v9, 0.0  ;;  %p1020_p2 = por %p1019_p13, %p1018_p5 }
  0x4f   : > { %v241_v35 = vadd.f32 %v240_v25, %v239_v14  ;;  %v273_v39 = vsel %vm230_vm0, %v1385_v24, 0.0  ;;  %v277_v44 = vmul.f32 0.16666667, %v252_v40 }
  0x50   : > { %v274_v42 = vadd.f32 %v273_v39, %v272_v34  ;;  %p1021_p4 = pnand %p1020_p2, %p1014_p0 }
  0x51   : > { %v276_v43 = vmul.f32 0.16666667, %v241_v35  ;;  %v1402_v50 = vsub.f32 %v1278_v18, %v277_v44  ;;  %v1405_v53 = vsub.f32 %v1281_v19, %v277_v44  ;;  %v1443_v60 = vsub.f32 %v1335_v45, %v277_v44 }
  0x52   : > { %602 = vbcast.lane.b32.xlu1 %v600_v36, 256  ;;  %595 = vbcast.lane.b32.xlu0 %v593_v41, 256  ;;  %v262_v36 = vsel %vm230_vm0, %v1382_v23, 0.0  ;;  %v279_v47 = vmul.f32 0.16666667, %v274_v42 }
  0x53   : > { %v263_v41 = vadd.f32 %v262_v36, %v261_v33  ;;  %v1396_v48 = vsub.f32 %v1269_v15, %v276_v43  ;;  %v1399_v49 = vsub.f32 %v1272_v16, %v276_v43  ;;  %v1420_v16 = vsub.f32 %v1296_v26, %v276_v43 }
  0x54   : > { %v1417_v15 = vsub.f32 %v1306_v30, %v279_v47  ;;  %v1437_v26 = vsub.f32 %v1320_v37, %v279_v47  ;;  %v1440_v58 = vsub.f32 %v1323_v38, %v276_v43  ;;  %v1458_v63 = vsub.f32 %v1350_v57, %v276_v43 }
  0x55   : > { %v278_v46 = vmul.f32 0.16666667, %v263_v41  ;;  %v304_v18 = vmul.f32 %v1396_v48, %v1396_v48  ;;  %v308_v19 = vmul.f32 %v1399_v49, %v1399_v49  ;;  %v312_v37 = vmul.f32 %v1420_v16, %v1420_v16 }
  0x56   : > { %616 = vbcast.lane.b32.xlu1 %v614_v55, 256  ;;  %609 = vbcast.lane.b32.xlu0 %v607_v56, 256  ;;  %v1411_v55 = vsub.f32 %v1303_v29, %v279_v47  ;;  %v305_v29 = vmul.f32 %v1402_v50, %v1402_v50  ;;  %v1468_v12 = vsub.f32 %v1345_v52, %v279_v47 }
  0x57   : > { %v1408_v54 = vsub.f32 %v1284_v20, %v278_v46  ;;  %v1414_v56 = vsub.f32 %v1287_v21, %v278_v46  ;;  %v1427_v20 = vsub.f32 %v1309_v31, %v277_v44  ;;  %v309_v21 = vmul.f32 %v1405_v53, %v1405_v53 }
  0x58   : > { %v1434_v30 = vsub.f32 %v1312_v32, %v278_v46  ;;  %v307_v61 = vmul.f32 %v1411_v55, %v1411_v55  ;;  %v311_v32 = vmul.f32 %v1417_v15, %v1417_v15  ;;  %v328_v38 = vsel %vm230_vm0, %v304_v18, 0.0 }
  0x59   : > { %v306_v31 = vmul.f32 %v1408_v54, %v1408_v54  ;;  %v310_v62 = vmul.f32 %v1414_v56, %v1414_v56  ;;  %v329_v45 = vsel %vm230_vm0, %v308_v19, 0.0  ;;  %v313_v0 = vmul.f32 %v1427_v20, %v1427_v20 }
  0x5a   : > { %v339_v7 = vsel %vm230_vm0, %v305_v29, 0.0  ;;  %v340_v8 = vsel %vm230_vm0, %v309_v21, 0.0  ;;  %v1465_v10 = vsub.f32 %v1342_v51, %v278_v46  ;;  %v314_v13 = vmul.f32 %v1434_v30, %v1434_v30 }
  0x5b   : > { %v315_v57 = vmul.f32 %v1437_v26, %v1437_v26  ;;  %v316_v14 = vmul.f32 %v1440_v58, %v1440_v58  ;;  %v330_v17 = vadd.f32 %v329_v45, %v328_v38  ;;  %v350_v22 = vsel %vm230_vm0, %v306_v31, 0.0 }
  0x5c   : > { %v351_v25 = vsel %vm230_vm0, %v310_v62, 0.0  ;;  %v331_v51 = vsel %vm230_vm0, %v312_v37, 0.0  ;;  %v341_v27 = vadd.f32 %v340_v8, %v339_v7  ;;  %v361_v52 = vsel %vm230_vm0, %v307_v61, 0.0 }
  0x5d   : > { %v362_v28 = vsel %vm230_vm0, %v311_v32, 0.0  ;;  %v1482_v33 = vsub.f32 %v1355_v59, %v277_v44  ;;  %v1485_v34 = vsub.f32 %v1362_v1, %v278_v46  ;;  %v317_v35 = vmul.f32 %v1443_v60, %v1443_v60 }
  0x5e   : > { %v342_v36 = vsel %vm230_vm0, %v313_v0, 0.0  ;;  %v1491_v39 = vsub.f32 %v1365_v6, %v279_v47  ;;  %v1494_v40 = vsub.f32 %v1370_v9, %v276_v43  ;;  %v318_v41 = vmul.f32 %v1465_v10, %v1465_v10 }
  0x5f   : > { %v352_v42 = vadd.f32 %v351_v25, %v350_v22  ;;  %v319_v59 = vmul.f32 %v1468_v12, %v1468_v12  ;;  %v332_v1 = vadd.f32 %v331_v51, %v330_v17  ;;  %v353_v18 = vsel %vm230_vm0, %v314_v13, 0.0 }
  0x60   : > { %v363_v19 = vadd.f32 %v362_v28, %v361_v52  ;;  %v320_v29 = vmul.f32 %v1458_v63, %v1458_v63  ;;  %v333_v6 = vsel %vm230_vm0, %v316_v14, 0.0  ;;  %v343_v21 = vadd.f32 %v342_v36, %v341_v27 }
  0x61   : > { %v364_v9 = vsel %vm230_vm0, %v315_v57, 0.0  ;;  %v1506_v43 = vsub.f32 %v1375_v11, %v277_v44  ;;  %v321_v31 = vmul.f32 %v1482_v33, %v1482_v33  ;;  %v344_v61 = vsel %vm230_vm0, %v317_v35, 0.0 }
  0x62   : > { %v1512_v62 = vsub.f32 %v1382_v23, %v278_v46  ;;  %v1515_v32 = vsub.f32 %v1385_v24, %v279_v47  ;;  %v322_v37 = vmul.f32 %v1485_v34, %v1485_v34  ;;  %v354_v38 = vadd.f32 %v353_v18, %v352_v42 }
  0x63   : > { %v323_v45 = vmul.f32 %v1491_v39, %v1491_v39  ;;  %v334_v11 = vadd.f32 %v333_v6, %v332_v1  ;;  %v355_v44 = vsel %vm230_vm0, %v318_v41, 0.0  ;;  %v365_v0 = vadd.f32 %v364_v9, %v363_v19 }
  0x64   : > { %v324_v7 = vmul.f32 %v1494_v40, %v1494_v40  ;;  %v335_v23 = vsel %vm230_vm0, %v320_v29, 0.0  ;;  %v345_v46 = vadd.f32 %v344_v61, %v343_v21  ;;  %v366_v24 = vsel %vm230_vm0, %v319_v59, 0.0 }
  0x65   : > { %v325_v47 = vmul.f32 %v1506_v43, %v1506_v43  ;;  %v346_v8 = vsel %vm230_vm0, %v321_v31, 0.0  ;;  %v356_v13 = vadd.f32 %v355_v44, %v354_v38  ;;  %v326_v57 = vmul.f32 %v1512_v62, %v1512_v62 }
  0x66   : > { %v336_v14 = vadd.f32 %v335_v23, %v334_v11  ;;  %v357_v17 = vsel %vm230_vm0, %v322_v37, 0.0  ;;  %v367_v22 = vadd.f32 %v366_v24, %v365_v0  ;;  %v327_v25 = vmul.f32 %v1515_v32, %v1515_v32 }
  0x67   : > { %v337_v51 = vsel %vm230_vm0, %v324_v7, 0.0  ;;  %v347_v27 = vadd.f32 %v346_v8, %v345_v46  ;;  %v368_v52 = vsel %vm230_vm0, %v323_v45, 0.0  ;;  %v348_v28 = vsel %vm230_vm0, %v325_v47, 0.0 }
  0x68   : > { %v358_v35 = vadd.f32 %v357_v17, %v356_v13  ;;  %v338_v36 = vadd.f32 %v337_v51, %v336_v14  ;;  %v359_v41 = vsel %vm230_vm0, %v326_v57, 0.0  ;;  %v369_v42 = vadd.f32 %v368_v52, %v367_v22 }
  0x69   : > { %v349_v59 = vadd.f32 %v348_v28, %v347_v27  ;;  %v370_v1 = vsel %vm230_vm0, %v327_v25, 0.0 }
  0x6a   : > { %v360_v18 = vadd.f32 %v359_v41, %v358_v35  ;;  %v371_v19 = vadd.f32 %v370_v1, %v369_v42  ;;  %v372_v29 = vmul.f32 0.2, %v338_v36 }
  0x6b   : > { %v373_v6 = vmul.f32 0.2, %v349_v59 }
  0x6c   : > { %v374_v21 = vmul.f32 0.2, %v360_v18  ;;  %v375_v9 = vmul.f32 0.2, %v371_v19  ;;  %965 = vrsqrt.f32 %v372_v29  ;;  %vm378_vm1 = vcmp.eq.f32.partialorder %v372_v29, inf }
  0x6d   : > { %967 = vrsqrt.f32 %v373_v6  ;;  %vm385_vm2 = vcmp.eq.f32.partialorder %v373_v6, inf  ;;  %vm380_vm3 = vcmp.eq.f32.partialorder %v372_v29, 0.0  ;;  %v381_v44 = vand.u32 2147483648, %v372_v29 }
  0x6e   : > { %969 = vrsqrt.f32 %v374_v21  ;;  %v388_v23 = vand.u32 2147483648, %v373_v6  ;;  %vm392_vm4 = vcmp.eq.f32.partialorder %v374_v21, inf  ;;  %vm387_vm5 = vcmp.eq.f32.partialorder %v373_v6, 0.0 }
  0x6f   : > { %971 = vrsqrt.f32 %v375_v9  ;;  %vm399_vm6 = vcmp.eq.f32.partialorder %v375_v9, inf  ;;  %v395_v47 = vand.u32 2147483648, %v374_v21  ;;  %vm394_vm7 = vcmp.eq.f32.partialorder %v374_v21, 0.0 }
  0x70   : > { %v402_v57 = vand.u32 2147483648, %v375_v9  ;;  %vm401_vm8 = vcmp.eq.f32.partialorder %v375_v9, 0.0 }
  0x76   : > { %v966_v31 = vpop.eup %965 }
  0x77   : > { %v968_v61 = vpop.eup %967  ;;  %v377_v38 = vmul.f32 %v966_v31, %v372_v29 }
  0x78   : > { %v970_v37 = vpop.eup %969  ;;  %v384_v11 = vmul.f32 %v968_v61, %v373_v6 }
  0x79   : > { %v972_v45 = vpop.eup %971  ;;  %v391_v0 = vmul.f32 %v970_v37, %v374_v21  ;;  %v379_v7 = vsel %vm378_vm1, %v372_v29, %v377_v38 }
  0x7a   : > { %v398_v46 = vmul.f32 %v972_v45, %v375_v9  ;;  %v386_v24 = vsel %vm385_vm2, %v373_v6, %v384_v11  ;;  %v382_v8 = vsel %vm380_vm3, %v381_v44, %v379_v7 }
  0x7b   : > { %v393_v13 = vsel %vm392_vm4, %v374_v21, %v391_v0  ;;  %v389_v14 = vsel %vm387_vm5, %v388_v23, %v386_v24  ;;  %v404_v25 = vadd.f32 1e-12, %v382_v8 }
  0x7c   : > { %v400_v17 = vsel %vm399_vm6, %v375_v9, %v398_v46  ;;  %v396_v22 = vsel %vm394_vm7, %v395_v47, %v393_v13  ;;  %v405_v27 = vadd.f32 1e-12, %v389_v14 }
  0x7d   : > { %v403_v51 = vsel %vm401_vm8, %v402_v57, %v400_v17  ;;  %v406_v52 = vadd.f32 1e-12, %v396_v22  ;;  %973 = vrcp.f32 %v404_v25 }
  0x7e   : > { %v407_v28 = vadd.f32 1e-12, %v403_v51  ;;  %975 = vrcp.f32 %v405_v27 }
  0x7f   : > { %977 = vrcp.f32 %v406_v52 }
  0x80   : > { %979 = vrcp.f32 %v407_v28 }
  0x87   : > { %v974_v35 = vpop.eup %973 }
  0x88   : > { %v976_v36 = vpop.eup %975  ;;  %v420_v42 = vmul.f32 %v974_v35, %v1420_v16  ;;  %v412_v59 = vmul.f32 %v974_v35, %v1396_v48  ;;  %v424_v1 = vmul.f32 %v974_v35, %v1440_v58  ;;  %v416_v18 = vmul.f32 %v974_v35, %v1399_v49 }
  0x89   : > { %v978_v41 = vpop.eup %977  ;;  %v421_v29 = vmul.f32 %v976_v36, %v1427_v20  ;;  %v413_v6 = vmul.f32 %v976_v36, %v1402_v50  ;;  %v425_v21 = vmul.f32 %v976_v36, %v1443_v60  ;;  %v417_v9 = vmul.f32 %v976_v36, %v1405_v53 }
  0x8a   : > { %v980_v19 = vpop.eup %979  ;;  %v432_v31 = vmul.f32 %v974_v35, %v1494_v40  ;;  %v433_v61 = vmul.f32 %v976_v36, %v1506_v43  ;;  %v1550_v16 = vmul.f32 %v974_v35, %v1458_v63  ;;  %v1553_v48 = vmul.f32 %v976_v36, %v1482_v33 }
  0x8b   : > { %v422_v49 = vmul.f32 %v978_v41, %v1434_v30  ;;  %v414_v20 = vmul.f32 %v978_v41, %v1408_v54  ;;  %v426_v50 = vmul.f32 %v978_v41, %v1465_v10  ;;  %v418_v58 = vmul.f32 %v978_v41, %v1414_v56 }
  0x8c   : > { %v423_v53 = vmul.f32 %v980_v19, %v1437_v26  ;;  %v415_v60 = vmul.f32 %v980_v19, %v1411_v55  ;;  %v434_v40 = vmul.f32 %v978_v41, %v1512_v62  ;;  %v430_v63 = vmul.f32 %v978_v41, %v1485_v34 }
  0x8d   : > { %v427_v33 = vmul.f32 %v980_v19, %v1468_v12  ;;  %v419_v30 = vmul.f32 %v980_v19, %v1417_v15  ;;  %v435_v54 = vmul.f32 %v980_v19, %v1515_v32  ;;  %v431_v10 = vmul.f32 %v980_v19, %v1491_v39 }
  0xb4   : > { %v457_v43 = vpop.permute.xlu1 %456  ;;  %v443_v37 = vpop.permute.xlu0 %442 }
  0xb5   : > { %v514_v56 = vrot.slane %v457_v43, %v1251_v3  ;;  %v518_v26 = vrot.slane %v457_v43, %v1257_v5  ;;  %v522_v55 = vrot.slane %v457_v43, %v1248_v2  ;;  %v526_v62 = vrot.slane %v457_v43, %v1254_v4 }
  0xb6   : > { %v482_v34 = vrot.slane %v443_v37, %v1251_v3  ;;  %v486_v38 = vrot.slane %v443_v37, %v1257_v5  ;;  %v490_v12 = vrot.slane %v443_v37, %v1248_v2  ;;  %v494_v15 = vrot.slane %v443_v37, %v1254_v4 }
  0xb7   : > { %v1575_v45 = vmul.f32 %v514_v56, %v420_v42  ;;  %v1577_v32 = vmul.f32 %v518_v26, %v421_v29  ;;  %v1579_v39 = vmul.f32 %v522_v55, %v422_v49  ;;  %v1581_v11 = vmul.f32 %v526_v62, %v423_v53 }
  0xb8   : > { %v714_v44 = vmul.f32 %v482_v34, %v412_v59  ;;  %v715_v0 = vmul.f32 %v486_v38, %v413_v6  ;;  %v716_v7 = vmul.f32 %v490_v12, %v414_v20  ;;  %v717_v23 = vmul.f32 %v494_v15, %v415_v60  ;;  %v464_v46 = vpop.permute.xlu1 %463  ;;  %v450_v24 = vpop.permute.xlu0 %449 }
  0xb9   : > { %v530_v47 = vrot.slane %v464_v46, %v1251_v3  ;;  %v534_v8 = vrot.slane %v464_v46, %v1257_v5  ;;  %v538_v13 = vrot.slane %v464_v46, %v1248_v2  ;;  %v542_v57 = vrot.slane %v464_v46, %v1254_v4 }
  0xba   : > { %v498_v14 = vrot.slane %v450_v24, %v1251_v3  ;;  %v502_v17 = vrot.slane %v450_v24, %v1257_v5  ;;  %v506_v22 = vrot.slane %v450_v24, %v1248_v2  ;;  %v510_v25 = vrot.slane %v450_v24, %v1254_v4 }
  0xbb   : > { %v1591_v51 = vmul.f32 %v530_v47, %v424_v1  ;;  %v1593_v27 = vmul.f32 %v534_v8, %v425_v21  ;;  %v1595_v52 = vmul.f32 %v538_v13, %v426_v50  ;;  %v1597_v28 = vmul.f32 %v542_v57, %v427_v33 }
  0xbc   : > { %v718_v35 = vmul.f32 %v498_v14, %v416_v18  ;;  %v719_v36 = vmul.f32 %v502_v17, %v417_v9  ;;  %v720_v41 = vmul.f32 %v506_v22, %v418_v58  ;;  %v721_v42 = vmul.f32 %v510_v25, %v419_v30  ;;  %v478_v59 = vpop.permute.xlu1 %477  ;;  %v471_v19 = vpop.permute.xlu0 %470 }
  0xbd   : > { %v562_v29 = vrot.slane %v478_v59, %v1251_v3  ;;  %v566_v6 = vrot.slane %v478_v59, %v1257_v5  ;;  %v570_v49 = vrot.slane %v478_v59, %v1248_v2  ;;  %v574_v1 = vrot.slane %v478_v59, %v1254_v4 }
  0xbe   : > { %v546_v21 = vrot.slane %v471_v19, %v1251_v3  ;;  %v550_v20 = vrot.slane %v471_v19, %v1257_v5  ;;  %v554_v50 = vrot.slane %v471_v19, %v1248_v2  ;;  %v558_v18 = vrot.slane %v471_v19, %v1254_v4 }
  0xbf   : > { %v1607_v9 = vmul.f32 %v562_v29, %v432_v31  ;;  %v1609_v58 = vmul.f32 %v566_v6, %v433_v61  ;;  %v1611_v53 = vmul.f32 %v570_v49, %v434_v40  ;;  %v1613_v60 = vmul.f32 %v574_v1, %v435_v54 }
  0xc0   : > { %v589_v43 = vpop.permute.xlu1 %588  ;;  %v582_v37 = vpop.permute.xlu0 %581  ;;  %v1616_v33 = vmul.f32 %v546_v21, %v1550_v16  ;;  %v1619_v30 = vmul.f32 %v550_v20, %v1553_v48  ;;  %v1621_v56 = vmul.f32 %v554_v50, %v430_v63  ;;  %v1623_v26 = vmul.f32 %v558_v18, %v431_v10 }
  0xc1   : > { %v637_v31 = vrot.slane %v589_v43, %v1251_v3  ;;  %v641_v61 = vrot.slane %v589_v43, %v1257_v5  ;;  %v645_v40 = vrot.slane %v589_v43, %v1248_v2  ;;  %v649_v54 = vrot.slane %v589_v43, %v1254_v4 }
  0xc2   : > { %v621_v55 = vrot.slane %v582_v37, %v1251_v3  ;;  %v625_v16 = vrot.slane %v582_v37, %v1257_v5  ;;  %v629_v48 = vrot.slane %v582_v37, %v1248_v2  ;;  %v633_v63 = vrot.slane %v582_v37, %v1254_v4 }
  0xc3   : > { %v742_v62 = vadd.f32 %v718_v35, %v637_v31  ;;  %v743_v10 = vadd.f32 %v719_v36, %v641_v61  ;;  %v744_v34 = vadd.f32 %v720_v41, %v645_v40  ;;  %v745_v38 = vadd.f32 %v721_v42, %v649_v54 }
  0xc4   : > { %v738_v12 = vadd.f32 %v714_v44, %v621_v55  ;;  %v739_v15 = vadd.f32 %v715_v0, %v625_v16  ;;  %v740_v46 = vadd.f32 %v716_v7, %v629_v48  ;;  %v741_v24 = vadd.f32 %v717_v23, %v633_v63  ;;  %v603_v47 = vpop.permute.xlu1 %602  ;;  %v596_v8 = vpop.permute.xlu0 %595 }
  0xc5   : > { %766 = vst [vmem:[%s1635_s10 + $0x4] sm:$0x1] %v742_v62  ;;  %767 = vst [vmem:[%s1635_s10 + $0x5] sm:$0x1] %v743_v10  ;;  %v669_v44 = vrot.slane %v603_v47, %v1251_v3  ;;  %v673_v0 = vrot.slane %v603_v47, %v1257_v5  ;;  %v677_v7 = vrot.slane %v603_v47, %v1248_v2 }
  0xc6   : > { %768 = vst [vmem:[%s1635_s10 + $0x6] sm:$0x1] %v744_v34  ;;  %769 = vst [vmem:[%s1635_s10 + $0x7] sm:$0x1] %v745_v38  ;;  %v681_v23 = vrot.slane %v603_v47, %v1254_v4  ;;  %v653_v13 = vrot.slane %v596_v8, %v1251_v3  ;;  %v657_v57 = vrot.slane %v596_v8, %v1257_v5 }
  0xc7   : > { %762 = vst [vmem:[%s1635_s10] sm:$0x1] %v738_v12  ;;  %763 = vst [vmem:[%s1635_s10 + $0x1] sm:$0x1] %v739_v15  ;;  %v661_v14 = vrot.slane %v596_v8, %v1248_v2  ;;  %v665_v17 = vrot.slane %v596_v8, %v1254_v4  ;;  %v750_v22 = vadd.f32 %v1591_v51, %v669_v44 }
  0xc8   : > { %764 = vst [vmem:[%s1635_s10 + $0x2] sm:$0x1] %v740_v46  ;;  %765 = vst [vmem:[%s1635_s10 + $0x3] sm:$0x1] %v741_v24  ;;  %v751_v25 = vadd.f32 %v1593_v27, %v673_v0  ;;  %v752_v35 = vadd.f32 %v1595_v52, %v677_v7  ;;  %v753_v36 = vadd.f32 %v1597_v28, %v681_v23  ;;  %v617_v29 = vpop.permute.xlu1 %616  ;;  %v610_v51 = vpop.permute.xlu0 %609 }
  0xc9   : > { %v746_v41 = vadd.f32 %v1575_v45, %v653_v13  ;;  %v747_v42 = vadd.f32 %v1577_v32, %v657_v57  ;;  %v748_v59 = vadd.f32 %v1579_v39, %v661_v14  ;;  %v749_v19 = vadd.f32 %v1581_v11, %v665_v17  ;;  %774 = vst [vmem:[%s1635_s10 + $0xc] sm:$0x1] %v750_v22 }
  0xca   : > { %775 = vst [vmem:[%s1635_s10 + $0xd] sm:$0x1] %v751_v25  ;;  %776 = vst [vmem:[%s1635_s10 + $0xe] sm:$0x1] %v752_v35  ;;  %v701_v27 = vrot.slane %v617_v29, %v1251_v3  ;;  %v705_v45 = vrot.slane %v617_v29, %v1257_v5  ;;  %v709_v52 = vrot.slane %v617_v29, %v1248_v2 }
  0xcb   : > { %777 = vst [vmem:[%s1635_s10 + $0xf] sm:$0x1] %v753_v36  ;;  %v713_v32 = vrot.slane %v617_v29, %v1254_v4  ;;  %770 = vst [vmem:[%s1635_s10 + $0x8] sm:$0x1] %v746_v41  ;;  %v685_v39 = vrot.slane %v610_v51, %v1251_v3  ;;  %v689_v11 = vrot.slane %v610_v51, %v1257_v5 }
  0xcc   : > { %771 = vst [vmem:[%s1635_s10 + $0x9] sm:$0x1] %v747_v42  ;;  %772 = vst [vmem:[%s1635_s10 + $0xa] sm:$0x1] %v748_v59  ;;  %v693_v28 = vrot.slane %v610_v51, %v1248_v2  ;;  %v697_v6 = vrot.slane %v610_v51, %v1254_v4  ;;  %v758_v49 = vadd.f32 %v1607_v9, %v701_v27 }
  0xcd   : > { %773 = vst [vmem:[%s1635_s10 + $0xb] sm:$0x1] %v749_v19  ;;  %v759_v3 = vadd.f32 %v1609_v58, %v705_v45  ;;  %v760_v5 = vadd.f32 %v1611_v53, %v709_v52  ;;  %v761_v2 = vadd.f32 %v1613_v60, %v713_v32  ;;  %v754_v4 = vadd.f32 %v1616_v33, %v685_v39 }
  0xce   : > { %v755_v1 = vadd.f32 %v1619_v30, %v689_v11  ;;  %v756_v21 = vadd.f32 %v1621_v56, %v693_v28  ;;  %v757_v20 = vadd.f32 %v1623_v26, %v697_v6  ;;  %782 = vst [vmem:[%s1635_s10 + $0x14] sm:$0x1] %v758_v49 }
  0xcf   : > { %783 = vst [vmem:[%s1635_s10 + $0x15] sm:$0x1] %v759_v3  ;;  %784 = vst [vmem:[%s1635_s10 + $0x16] sm:$0x1] %v760_v5 }
  0xd0   : > { %785 = vst [vmem:[%s1635_s10 + $0x17] sm:$0x1] %v761_v2  ;;  %778 = vst [vmem:[%s1635_s10 + $0x10] sm:$0x1] %v754_v4 }
  0xd1   : > { %779 = vst [vmem:[%s1635_s10 + $0x11] sm:$0x1] %v755_v1  ;;  %780 = vst [vmem:[%s1635_s10 + $0x12] sm:$0x1] %v756_v21 }
  0xd2   : > { %781 = vst [vmem:[%s1635_s10 + $0x13] sm:$0x1] %v757_v20 }
  0xd3   : > { %1024 = shalt.err (!%p1021_p4)
}
  0xd4   : > { %s1025_s19 = scalar_lea.hbm %s1682_s29, 384  ;;  %s1029_s7 = scalar_lea.hbm %s1752_s3, 768 }
  0xd5   : > { %p1026_p6 = scmp.ne.s32.totalorder %s1682_s29, %s1025_s19  ;;  %p1030_p12 = scmp.lt.u32.totalorder %s1682_s29, %s1752_s3 }
  0xd6   : > { %p1031_p1 = scmp.lt.u32.totalorder %s1029_s7, %s1025_s19  ;;  %p1033_p8 = scmp.lt.u32.totalorder %s1025_s19, %s1682_s29 }
  0xd7   : > { %p1027_p7 = pnand %p1026_p6, %p1760_p9 }
  0xd8   : > { %p1032_p3 = por %p1031_p1, %p1030_p12 }
  0xd9   : > { %p1028_p10 = pneg %p1027_p7 }
  0xda   : > { %p1034_p11 = por %p1033_p8, %p1032_p3 }
  0xdc   : > { %p1035_p0 = pnand %p1034_p11, %p1028_p10 }
  0xde   : > { %1038 = shalt.err (!%p1035_p0)
}
  0xdf   : > { %s1099_s10 = smov 16   ;;  %s1100_s22 = smov 1  }
  0xe0   : > { %901 = dma.vmem_to_hbm [thread:$0]  (%p1760_p9), %s1688_s15, 384, %s1682_s29, %s787_s30, %s1099_s10, %s1099_s10, %s1100_s22  }
  0xe1 PF: > { %s816_s23 = sand.u32 1, %s1073_s12   ;;  %p1761_p5 = scmp.ne.s32.totalorder %s1757_s27, 0 }
  0xe2   : > { %p1762_p13 = scmp.ge.s32.totalorder %s1093_s17, 2  ;;  %s817_s28 = scalar_lea.sflag [#allocation4], %s816_s23 }
  0xe4   : > { %p908_p2 = pnand %p1762_p13, %p1761_p5 }
  0xe6   : > { %1068 = dma.done.wait (!%p908_p2), %s817_s28, 384  }
  0xe7   : > { %1070 = vsyncadd (!%p908_p2), %s817_s28, 4294966912  ;;  %s19_s17 = sadd.s32 1, %s1093_s17   ;;  %s1763_s12 = smov %s1077_s13 }
  0xe8   : > { %p16_p4 = scmp.ge.s32.totalorder %s19_s17, 4   ;;  %s1764_s13 = smov %s1081_s14 }
  0xe9   : > { %s1765_s14 = smov %s1177_s26  ;;  %s1766_s15 = smov %s1089_s16 }
  0xea   : > { %s1767_s16 = smov %s1769_s20  ;;  %18 = sbr.rel (!%p16_p4) target bundleno = 6 (0x6), region = 77 }
  0xf1   :  { %822 = vsyncpa [#allocation3], 1 }
  0xf2   :  { %824 = vsyncpa [#allocation3 + $0x1], 1 }
  0xf3   :  { %825 = vsyncpa [#allocation4], 1 }
  0xf4   :  { %827 = vsyncpa [#allocation4 + $0x1], 1 }

</bundles_post_ra>
